<compile_context>
chip_gen: v7x
topology: tpu7x:2x2x1
jax: 0.10.0
libtpu: 0.0.40
codegen_flags: <defaults>
</compile_context>

<pallas_src>
import functools
import math

import jax
import jax.numpy as jnp
from jax.experimental import pallas as pl
from jax.experimental.pallas import tpu as pltpu


def w_exp(chs, mult):
    return math.ceil(chs * mult / 8) * 8 if mult != 1 else chs


# ----------------------------- Pallas kernel --------------------------------
def conv_bn_silu_kernel(col_ref, x_ref, w_ref, b_ref, o_ref, *, H, W, KH, KW):
    """Direct KHxKW stride-1 conv + folded-BN bias + SiLU for one batch item.

    col_ref: (1, H*W)           int32 column index of each flat output position
    x_ref:   (1, Cin_p, Lp)     row-padded, end-guarded, flattened activations
    w_ref:   (KH*KW, Cout, Cin_p)  BN-scale-folded per-tap weights
    b_ref:   (Cout, 1)          folded BN bias (f32)
    o_ref:   (1, Cout, H*W)     output, spatial axis lane-dense
    """
    ph, pw = KH // 2, KW // 2
    HW = H * W
    Cout = b_ref.shape[0]

    # Column index, broadcast once (hoisted out of the tap loops).
    col = jnp.broadcast_to(col_ref[...], (Cout, HW))

    acc = jnp.zeros((Cout, HW), jnp.float32)
    for dw in range(-pw, pw + 1):
        part = jnp.zeros((Cout, HW), jnp.float32)
        for dh in range(-ph, ph + 1):
            t = (dh + ph) * KW + (dw + pw)
            # Static lane window: element i (= h*W + w) of the window holds
            # x[ci, h+dh, w+dw]; out-of-range rows hit the zero row padding.
            start = pw + (ph + dh) * W + dw
            x_win = x_ref[0, :, start:start + HW]              # (Cin_p, HW)
            part = part + jnp.dot(w_ref[t], x_win,
                                  preferred_element_type=jnp.float32)
        if dw != 0:
            # Zero contributions whose source column w+dw falls outside [0, W)
            # (those lanes read the neighbouring row / guard elements).
            valid = (col + dw >= 0) & (col + dw < W)
            part = jnp.where(valid, part, 0.0)
        acc = acc + part

    y = acc + b_ref[...]                                       # (Cout, HW) f32
    o_ref[0] = (y * jax.nn.sigmoid(y)).astype(o_ref.dtype)     # SiLU


def fused_conv_bn_silu(col_idx, x_flat, w_taps, bias2d, *, H, W, KH, KW):
    N, Cin_p, Lp = x_flat.shape
    KK, Cout, _ = w_taps.shape
    HW = H * W
    kernel = functools.partial(conv_bn_silu_kernel, H=H, W=W, KH=KH, KW=KW)
    return pl.pallas_call(
        kernel,
        out_shape=jax.ShapeDtypeStruct((N, Cout, HW), jnp.float32),
        grid_spec=pltpu.PrefetchScalarGridSpec(
            num_scalar_prefetch=0,
            grid=(N,),  # >=2 parallel steps -> both v7x TensorCores get work
            in_specs=[
                pl.BlockSpec((1, HW), lambda n: (0, 0)),               # col idx
                pl.BlockSpec((1, Cin_p, Lp), lambda n: (n, 0, 0)),     # activations
                pl.BlockSpec((KK, Cout, Cin_p), lambda n: (0, 0, 0)),  # weights
                pl.BlockSpec((Cout, 1), lambda n: (0, 0)),             # bias
            ],
            out_specs=pl.BlockSpec((1, Cout, HW), lambda n: (n, 0, 0)),
        ),
        compiler_params=pltpu.CompilerParams(
            dimension_semantics=("parallel",)),
    )(col_idx, x_flat, w_taps, bias2d)


# ------------------------------- glue / wrapper ------------------------------
def conv_block_forward(x_nchw, conv_w, gamma, beta, run_mean, run_var,
                       *, stride=1, eps=1e-5, compute_dtype=jnp.float32):
    """ConvBlock forward: Conv2d(bias=False) -> BatchNorm2d(eval) -> SiLU."""
    N, Cin, H, W = x_nchw.shape
    Cout, Cin_w, KH, KW = conv_w.shape
    # TODO(synk): stride > 1 and groups > 1 paths are not implemented in the fused kernel.
    assert stride == 1 and Cin_w == Cin
    ph, pw = KH // 2, KW // 2  # autopad

    # Fold BN (eval semantics, running stats) into the conv weights + a bias.
    inv_std = 1.0 / jnp.sqrt(run_var + eps)
    scale = gamma * inv_std                                # (Cout,)
    bias = beta - run_mean * scale                         # (Cout,)
    w_folded = conv_w * scale[:, None, None, None]         # (Cout, Cin, KH, KW)

    # Pad channels to a sublane multiple (no-op when Cin % 8 == 0).
    cin_p = ((Cin + 7) // 8) * 8
    if cin_p != Cin:
        x_nchw = jnp.pad(x_nchw, ((0, 0), (0, cin_p - Cin), (0, 0), (0, 0)))
        w_folded = jnp.pad(w_folded, ((0, 0), (0, cin_p - Cin), (0, 0), (0, 0)))

    # Per-tap weights: (KH*KW, Cout, Cin_p), tap index t = kh*KW + kw.
    w_taps = jnp.transpose(w_folded, (2, 3, 0, 1)).reshape(KH * KW, Cout, cin_p)

    # Row-pad, flatten spatial, add KW//2 guard elements on each end so every
    # tap is a static in-bounds lane window (only ~13% more bytes than the raw
    # input, vs 9x for HBM im2col).
    xp = jnp.pad(x_nchw, ((0, 0), (0, 0), (ph, ph), (0, 0)))
    x_flat = xp.reshape(N, cin_p, (H + 2 * ph) * W)
    x_flat = jnp.pad(x_flat, ((0, 0), (0, 0), (pw, pw)))

    # Column index of each flat output position (avoids in-kernel int div/mod).
    col_idx = jnp.tile(jnp.arange(W, dtype=jnp.int32), H).reshape(1, H * W)

    out = fused_conv_bn_silu(col_idx,
                             x_flat.astype(compute_dtype),
                             w_taps.astype(compute_dtype),
                             bias.reshape(Cout, 1).astype(jnp.float32),
                             H=H, W=W, KH=KH, KW=KW)

    # (N, Cout, H*W) is already NCHW-contiguous -> free reshape, no transpose.
    return out.reshape(N, Cout, H, W)
    # TODO(synk): for very large H*W, tile the spatial axis with a row-band halo
    # instead of one whole feature map per grid step.


# ------------------------------- reference -----------------------------------
def reference_forward(x_nchw, conv_w, gamma, beta, run_mean, run_var,
                      *, eps=1e-5):
    y = jax.lax.conv_general_dilated(
        x_nchw, conv_w, window_strides=(1, 1), padding="SAME",
        dimension_numbers=("NCHW", "OIHW", "NCHW"))
    scale = (gamma / jnp.sqrt(run_var + eps)).reshape(1, -1, 1, 1)
    bias = (beta - run_mean * gamma / jnp.sqrt(run_var + eps)).reshape(1, -1, 1, 1)
    y = y * scale + bias
    return y * jax.nn.sigmoid(y)


if __name__ == "__main__":
    # ConvBlock(in_channels=4, out_channels=8, w_mult=1.0, kernel=3, stride=1)
    in_channels = w_exp(4, 1.0)    # 4
    out_channels = w_exp(8, 1.0)   # 8
    KH = KW = 3
    N, H, W = 2, 16, 16

    key = jax.random.PRNGKey(0)
    kx, kw, kg, kb, km, kv = jax.random.split(key, 6)

    x = jax.random.normal(kx, (N, in_channels, H, W), dtype=jnp.float32)
    conv_w = 0.1 * jax.random.normal(kw, (out_channels, in_channels, KH, KW),
                                     dtype=jnp.float32)
    gamma = 1.0 + 0.1 * jax.random.normal(kg, (out_channels,), jnp.float32)
    beta = 0.1 * jax.random.normal(kb, (out_channels,), jnp.float32)
    run_mean = 0.1 * jax.random.normal(km, (out_channels,), jnp.float32)
    run_var = jnp.abs(jax.random.normal(kv, (out_channels,), jnp.float32)) + 0.5

    out = conv_block_forward(x, conv_w, gamma, beta, run_mean, run_var)
    out = jax.block_until_ready(out)

    ref = reference_forward(x, conv_w, gamma, beta, run_mean, run_var)
    assert out.shape == (N, out_channels, H, W)
    max_err = float(jnp.max(jnp.abs(out - ref)))
    assert max_err < 1e-4, f"max abs err {max_err}"

    print("KERNEL_OK")
</pallas_src>

<mosaic_0001>
module attributes {stable_mosaic.version = 11 : i64} {
  func.func @conv_bn_silu_kernel(%arg0: i32, %arg1: memref<1x256xi32, #tpu.memory_space<vmem>>, %arg2: memref<1x8x290xf32, #tpu.memory_space<vmem>>, %arg3: memref<9x8x8xf32, #tpu.memory_space<vmem>>, %arg4: memref<8x1xf32, #tpu.memory_space<vmem>>, %arg5: memref<1x8x256xf32, #tpu.memory_space<vmem>>) attributes {dimension_semantics = [#tpu.dimension_semantics<parallel>], iteration_bounds = array<i64: 2>, scalar_prefetch = 0 : i64, scratch_operands = 0 : i64, tpu.core_type = #tpu.core_type<tc>, window_params = [{pipeline_mode = #tpu.pipeline_mode<synchronous>, transform_indices = @transform_0, window_bounds = array<i64: 1, 256>}, {transform_indices = @transform_1, window_bounds = array<i64: 1, 8, 290>}, {pipeline_mode = #tpu.pipeline_mode<synchronous>, transform_indices = @transform_2, window_bounds = array<i64: 9, 8, 8>}, {pipeline_mode = #tpu.pipeline_mode<synchronous>, transform_indices = @transform_3, window_bounds = array<i64: 8, 1>}, {transform_indices = @transform_4, window_bounds = array<i64: 1, 8, 256>}]} {
    %c0 = arith.constant 0 : index
    %c0_0 = arith.constant 0 : index
    %0 = vector.load %arg1[%c0, %c0_0] : memref<1x256xi32, #tpu.memory_space<vmem>>, vector<1x256xi32>
    %1 = vector.shape_cast %0 : vector<1x256xi32> to vector<1x256xi32>
    %2 = vector.broadcast %1 : vector<1x256xi32> to vector<8x256xi32>
    %cst = arith.constant 0.000000e+00 : f32
    %3 = vector.broadcast %cst : f32 to vector<8x256xf32>
    %cst_1 = arith.constant 0.000000e+00 : f32
    %4 = vector.broadcast %cst_1 : f32 to vector<8x256xf32>
    %c0_2 = arith.constant 0 : index
    %c0_3 = arith.constant 0 : index
    %c0_4 = arith.constant 0 : index
    %5 = vector.load %arg2[%c0_2, %c0_3, %c0_4] : memref<1x8x290xf32, #tpu.memory_space<vmem>>, vector<1x8x256xf32>
    %6 = vector.shape_cast %5 : vector<1x8x256xf32> to vector<8x256xf32>
    %c0_5 = arith.constant 0 : index
    %c0_6 = arith.constant 0 : index
    %c0_7 = arith.constant 0 : index
    %7 = vector.load %arg3[%c0_5, %c0_6, %c0_7] : memref<9x8x8xf32, #tpu.memory_space<vmem>>, vector<1x8x8xf32>
    %8 = vector.shape_cast %7 : vector<1x8x8xf32> to vector<8x8xf32>
    %cst_8 = arith.constant dense<0.000000e+00> : vector<8x256xf32>
    %9 = tpu.matmul %8, %6, %cst_8 {dimension_numbers = #tpu.dot_dimension_numbers<[1], [0], [0], [1], [0, 0, 1, 1], [], []>} : vector<8x8xf32>, vector<8x256xf32>, vector<8x256xf32> -> vector<8x256xf32>
    %10 = arith.addf %4, %9 : vector<8x256xf32>
    %c0_9 = arith.constant 0 : index
    %c0_10 = arith.constant 0 : index
    %c16 = arith.constant 16 : index
    %11 = vector.load %arg2[%c0_9, %c0_10, %c16] : memref<1x8x290xf32, #tpu.memory_space<vmem>>, vector<1x8x256xf32>
    %12 = vector.shape_cast %11 : vector<1x8x256xf32> to vector<8x256xf32>
    %c3 = arith.constant 3 : index
    %c0_11 = arith.constant 0 : index
    %c0_12 = arith.constant 0 : index
    %13 = vector.load %arg3[%c3, %c0_11, %c0_12] : memref<9x8x8xf32, #tpu.memory_space<vmem>>, vector<1x8x8xf32>
    %14 = vector.shape_cast %13 : vector<1x8x8xf32> to vector<8x8xf32>
    %cst_13 = arith.constant dense<0.000000e+00> : vector<8x256xf32>
    %15 = tpu.matmul %14, %12, %cst_13 {dimension_numbers = #tpu.dot_dimension_numbers<[1], [0], [0], [1], [0, 0, 1, 1], [], []>} : vector<8x8xf32>, vector<8x256xf32>, vector<8x256xf32> -> vector<8x256xf32>
    %16 = arith.addf %10, %15 : vector<8x256xf32>
    %c0_14 = arith.constant 0 : index
    %c0_15 = arith.constant 0 : index
    %c32 = arith.constant 32 : index
    %17 = vector.load %arg2[%c0_14, %c0_15, %c32] : memref<1x8x290xf32, #tpu.memory_space<vmem>>, vector<1x8x256xf32>
    %18 = vector.shape_cast %17 : vector<1x8x256xf32> to vector<8x256xf32>
    %c6 = arith.constant 6 : index
    %c0_16 = arith.constant 0 : index
    %c0_17 = arith.constant 0 : index
    %19 = vector.load %arg3[%c6, %c0_16, %c0_17] : memref<9x8x8xf32, #tpu.memory_space<vmem>>, vector<1x8x8xf32>
    %20 = vector.shape_cast %19 : vector<1x8x8xf32> to vector<8x8xf32>
    %cst_18 = arith.constant dense<0.000000e+00> : vector<8x256xf32>
    %21 = tpu.matmul %20, %18, %cst_18 {dimension_numbers = #tpu.dot_dimension_numbers<[1], [0], [0], [1], [0, 0, 1, 1], [], []>} : vector<8x8xf32>, vector<8x256xf32>, vector<8x256xf32> -> vector<8x256xf32>
    %22 = arith.addf %16, %21 : vector<8x256xf32>
    %c-1_i32 = arith.constant -1 : i32
    %23 = vector.broadcast %c-1_i32 : i32 to vector<8x256xi32>
    %24 = arith.addi %2, %23 : vector<8x256xi32>
    %c0_i32 = arith.constant 0 : i32
    %25 = vector.broadcast %c0_i32 : i32 to vector<8x256xi32>
    %26 = arith.cmpi sge, %24, %25 : vector<8x256xi32>
    %c-1_i32_19 = arith.constant -1 : i32
    %27 = vector.broadcast %c-1_i32_19 : i32 to vector<8x256xi32>
    %28 = arith.addi %2, %27 : vector<8x256xi32>
    %c16_i32 = arith.constant 16 : i32
    %29 = vector.broadcast %c16_i32 : i32 to vector<8x256xi32>
    %30 = arith.cmpi slt, %28, %29 : vector<8x256xi32>
    %31 = arith.andi %26, %30 : vector<8x256xi1>
    %cst_20 = arith.constant 0.000000e+00 : f32
    %32 = vector.broadcast %cst_20 : f32 to vector<8x256xf32>
    %33 = arith.select %31, %22, %32 : vector<8x256xi1>, vector<8x256xf32>
    %34 = arith.addf %3, %33 : vector<8x256xf32>
    %cst_21 = arith.constant 0.000000e+00 : f32
    %35 = vector.broadcast %cst_21 : f32 to vector<8x256xf32>
    %c0_22 = arith.constant 0 : index
    %c0_23 = arith.constant 0 : index
    %c1 = arith.constant 1 : index
    %36 = vector.load %arg2[%c0_22, %c0_23, %c1] : memref<1x8x290xf32, #tpu.memory_space<vmem>>, vector<1x8x256xf32>
    %37 = vector.shape_cast %36 : vector<1x8x256xf32> to vector<8x256xf32>
    %c1_24 = arith.constant 1 : index
    %c0_25 = arith.constant 0 : index
    %c0_26 = arith.constant 0 : index
    %38 = vector.load %arg3[%c1_24, %c0_25, %c0_26] : memref<9x8x8xf32, #tpu.memory_space<vmem>>, vector<1x8x8xf32>
    %39 = vector.shape_cast %38 : vector<1x8x8xf32> to vector<8x8xf32>
    %cst_27 = arith.constant dense<0.000000e+00> : vector<8x256xf32>
    %40 = tpu.matmul %39, %37, %cst_27 {dimension_numbers = #tpu.dot_dimension_numbers<[1], [0], [0], [1], [0, 0, 1, 1], [], []>} : vector<8x8xf32>, vector<8x256xf32>, vector<8x256xf32> -> vector<8x256xf32>
    %41 = arith.addf %35, %40 : vector<8x256xf32>
    %c0_28 = arith.constant 0 : index
    %c0_29 = arith.constant 0 : index
    %c17 = arith.constant 17 : index
    %42 = vector.load %arg2[%c0_28, %c0_29, %c17] : memref<1x8x290xf32, #tpu.memory_space<vmem>>, vector<1x8x256xf32>
    %43 = vector.shape_cast %42 : vector<1x8x256xf32> to vector<8x256xf32>
    %c4 = arith.constant 4 : index
    %c0_30 = arith.constant 0 : index
    %c0_31 = arith.constant 0 : index
    %44 = vector.load %arg3[%c4, %c0_30, %c0_31] : memref<9x8x8xf32, #tpu.memory_space<vmem>>, vector<1x8x8xf32>
    %45 = vector.shape_cast %44 : vector<1x8x8xf32> to vector<8x8xf32>
    %cst_32 = arith.constant dense<0.000000e+00> : vector<8x256xf32>
    %46 = tpu.matmul %45, %43, %cst_32 {dimension_numbers = #tpu.dot_dimension_numbers<[1], [0], [0], [1], [0, 0, 1, 1], [], []>} : vector<8x8xf32>, vector<8x256xf32>, vector<8x256xf32> -> vector<8x256xf32>
    %47 = arith.addf %41, %46 : vector<8x256xf32>
    %c0_33 = arith.constant 0 : index
    %c0_34 = arith.constant 0 : index
    %c33 = arith.constant 33 : index
    %48 = vector.load %arg2[%c0_33, %c0_34, %c33] : memref<1x8x290xf32, #tpu.memory_space<vmem>>, vector<1x8x256xf32>
    %49 = vector.shape_cast %48 : vector<1x8x256xf32> to vector<8x256xf32>
    %c7 = arith.constant 7 : index
    %c0_35 = arith.constant 0 : index
    %c0_36 = arith.constant 0 : index
    %50 = vector.load %arg3[%c7, %c0_35, %c0_36] : memref<9x8x8xf32, #tpu.memory_space<vmem>>, vector<1x8x8xf32>
    %51 = vector.shape_cast %50 : vector<1x8x8xf32> to vector<8x8xf32>
    %cst_37 = arith.constant dense<0.000000e+00> : vector<8x256xf32>
    %52 = tpu.matmul %51, %49, %cst_37 {dimension_numbers = #tpu.dot_dimension_numbers<[1], [0], [0], [1], [0, 0, 1, 1], [], []>} : vector<8x8xf32>, vector<8x256xf32>, vector<8x256xf32> -> vector<8x256xf32>
    %53 = arith.addf %47, %52 : vector<8x256xf32>
    %54 = arith.addf %34, %53 : vector<8x256xf32>
    %cst_38 = arith.constant 0.000000e+00 : f32
    %55 = vector.broadcast %cst_38 : f32 to vector<8x256xf32>
    %c0_39 = arith.constant 0 : index
    %c0_40 = arith.constant 0 : index
    %c2 = arith.constant 2 : index
    %56 = vector.load %arg2[%c0_39, %c0_40, %c2] : memref<1x8x290xf32, #tpu.memory_space<vmem>>, vector<1x8x256xf32>
    %57 = vector.shape_cast %56 : vector<1x8x256xf32> to vector<8x256xf32>
    %c2_41 = arith.constant 2 : index
    %c0_42 = arith.constant 0 : index
    %c0_43 = arith.constant 0 : index
    %58 = vector.load %arg3[%c2_41, %c0_42, %c0_43] : memref<9x8x8xf32, #tpu.memory_space<vmem>>, vector<1x8x8xf32>
    %59 = vector.shape_cast %58 : vector<1x8x8xf32> to vector<8x8xf32>
    %cst_44 = arith.constant dense<0.000000e+00> : vector<8x256xf32>
    %60 = tpu.matmul %59, %57, %cst_44 {dimension_numbers = #tpu.dot_dimension_numbers<[1], [0], [0], [1], [0, 0, 1, 1], [], []>} : vector<8x8xf32>, vector<8x256xf32>, vector<8x256xf32> -> vector<8x256xf32>
    %61 = arith.addf %55, %60 : vector<8x256xf32>
    %c0_45 = arith.constant 0 : index
    %c0_46 = arith.constant 0 : index
    %c18 = arith.constant 18 : index
    %62 = vector.load %arg2[%c0_45, %c0_46, %c18] : memref<1x8x290xf32, #tpu.memory_space<vmem>>, vector<1x8x256xf32>
    %63 = vector.shape_cast %62 : vector<1x8x256xf32> to vector<8x256xf32>
    %c5 = arith.constant 5 : index
    %c0_47 = arith.constant 0 : index
    %c0_48 = arith.constant 0 : index
    %64 = vector.load %arg3[%c5, %c0_47, %c0_48] : memref<9x8x8xf32, #tpu.memory_space<vmem>>, vector<1x8x8xf32>
    %65 = vector.shape_cast %64 : vector<1x8x8xf32> to vector<8x8xf32>
    %cst_49 = arith.constant dense<0.000000e+00> : vector<8x256xf32>
    %66 = tpu.matmul %65, %63, %cst_49 {dimension_numbers = #tpu.dot_dimension_numbers<[1], [0], [0], [1], [0, 0, 1, 1], [], []>} : vector<8x8xf32>, vector<8x256xf32>, vector<8x256xf32> -> vector<8x256xf32>
    %67 = arith.addf %61, %66 : vector<8x256xf32>
    %c0_50 = arith.constant 0 : index
    %c0_51 = arith.constant 0 : index
    %c34 = arith.constant 34 : index
    %68 = vector.load %arg2[%c0_50, %c0_51, %c34] : memref<1x8x290xf32, #tpu.memory_space<vmem>>, vector<1x8x256xf32>
    %69 = vector.shape_cast %68 : vector<1x8x256xf32> to vector<8x256xf32>
    %c8 = arith.constant 8 : index
    %c0_52 = arith.constant 0 : index
    %c0_53 = arith.constant 0 : index
    %70 = vector.load %arg3[%c8, %c0_52, %c0_53] : memref<9x8x8xf32, #tpu.memory_space<vmem>>, vector<1x8x8xf32>
    %71 = vector.shape_cast %70 : vector<1x8x8xf32> to vector<8x8xf32>
    %cst_54 = arith.constant dense<0.000000e+00> : vector<8x256xf32>
    %72 = tpu.matmul %71, %69, %cst_54 {dimension_numbers = #tpu.dot_dimension_numbers<[1], [0], [0], [1], [0, 0, 1, 1], [], []>} : vector<8x8xf32>, vector<8x256xf32>, vector<8x256xf32> -> vector<8x256xf32>
    %73 = arith.addf %67, %72 : vector<8x256xf32>
    %c1_i32 = arith.constant 1 : i32
    %74 = vector.broadcast %c1_i32 : i32 to vector<8x256xi32>
    %75 = arith.addi %2, %74 : vector<8x256xi32>
    %c0_i32_55 = arith.constant 0 : i32
    %76 = vector.broadcast %c0_i32_55 : i32 to vector<8x256xi32>
    %77 = arith.cmpi sge, %75, %76 : vector<8x256xi32>
    %c1_i32_56 = arith.constant 1 : i32
    %78 = vector.broadcast %c1_i32_56 : i32 to vector<8x256xi32>
    %79 = arith.addi %2, %78 : vector<8x256xi32>
    %c16_i32_57 = arith.constant 16 : i32
    %80 = vector.broadcast %c16_i32_57 : i32 to vector<8x256xi32>
    %81 = arith.cmpi slt, %79, %80 : vector<8x256xi32>
    %82 = arith.andi %77, %81 : vector<8x256xi1>
    %cst_58 = arith.constant 0.000000e+00 : f32
    %83 = vector.broadcast %cst_58 : f32 to vector<8x256xf32>
    %84 = arith.select %82, %73, %83 : vector<8x256xi1>, vector<8x256xf32>
    %85 = arith.addf %54, %84 : vector<8x256xf32>
    %c0_59 = arith.constant 0 : index
    %c0_60 = arith.constant 0 : index
    %86 = vector.load %arg4[%c0_59, %c0_60] : memref<8x1xf32, #tpu.memory_space<vmem>>, vector<8x1xf32>
    %87 = vector.broadcast %86 : vector<8x1xf32> to vector<8x256xf32>
    %88 = arith.addf %85, %87 : vector<8x256xf32>
    %89 = arith.negf %88 : vector<8x256xf32>
    %90 = math.exp %89 : vector<8x256xf32>
    %cst_61 = arith.constant 1.000000e+00 : f32
    %91 = vector.broadcast %cst_61 : f32 to vector<8x256xf32>
    %92 = arith.addf %91, %90 : vector<8x256xf32>
    %93 = arith.divf %91, %92 : vector<8x256xf32>
    %94 = arith.mulf %88, %93 : vector<8x256xf32>
    %c0_62 = arith.constant 0 : index
    %c0_63 = arith.constant 0 : index
    %c0_64 = arith.constant 0 : index
    %95 = vector.load %arg5[%c0_62, %c0_63, %c0_64] : memref<1x8x256xf32, #tpu.memory_space<vmem>>, vector<1x8x256xf32>
    %96 = vector.shape_cast %95 : vector<1x8x256xf32> to vector<8x256xf32>
    %97 = vector.shape_cast %94 : vector<8x256xf32> to vector<1x8x256xf32>
    tpu.vector_store %arg5[%c0_62, %c0_63, %c0_64], %97 {strides = array<i32>} : memref<1x8x256xf32, #tpu.memory_space<vmem>>, vector<1x8x256xf32>,
    return
  }
  func.func @transform_0(%arg0: i32) -> (i32, i32) {
    %c0_i32 = arith.constant 0 : i32
    %c0_i32_0 = arith.constant 0 : i32
    %c0_i32_1 = arith.constant 0 : i32
    return %c0_i32, %c0_i32_0 : i32, i32
  }
  func.func @transform_1(%arg0: i32) -> (i32, i32, i32) {
    %c0_i32 = arith.constant 0 : i32
    %c0_i32_0 = arith.constant 0 : i32
    %c0_i32_1 = arith.constant 0 : i32
    return %arg0, %c0_i32, %c0_i32_0 : i32, i32, i32
  }
  func.func @transform_2(%arg0: i32) -> (i32, i32, i32) {
    %c0_i32 = arith.constant 0 : i32
    %c0_i32_0 = arith.constant 0 : i32
    %c0_i32_1 = arith.constant 0 : i32
    %c0_i32_2 = arith.constant 0 : i32
    return %c0_i32, %c0_i32_0, %c0_i32_1 : i32, i32, i32
  }
  func.func @transform_3(%arg0: i32) -> (i32, i32) {
    %c0_i32 = arith.constant 0 : i32
    %c0_i32_0 = arith.constant 0 : i32
    %c0_i32_1 = arith.constant 0 : i32
    return %c0_i32, %c0_i32_0 : i32, i32
  }
  func.func @transform_4(%arg0: i32) -> (i32, i32, i32) {
    %c0_i32 = arith.constant 0 : i32
    %c0_i32_0 = arith.constant 0 : i32
    %c0_i32_1 = arith.constant 0 : i32
    return %arg0, %c0_i32, %c0_i32_0 : i32, i32, i32
  }
}

</mosaic_0001>

<bundles_post_ra>
// kernel: tpu_custom_call.1
= control target key start
LH: loop header
LB: loop body
LE: loop exit
PB: predicated region body
PF: predicated region fallthrough
CT: control target
= control target key end

     0   :  { %9 = vsyncpa [#allocation3], 0  ;;  %s1466_s0 = inlined_call_operand.vmem [shape: s32[1,256], index: 0, kind: input, shape index: {}]   ;;  %s1467_s1 = inlined_call_operand.vmem [shape: f32[2,8,290], index: 1, kind: input, shape index: {}]   ;;  %s1468_s2 = inlined_call_operand.vmem [shape: f32[9,8,8], index: 2, kind: input, shape index: {}]   ;;  %s1469_s3 = inlined_call_operand.vmem [shape: f32[8,1], index: 3, kind: input, shape index: {}]   ;;  %s1470_s4 = inlined_call_operand.hbm [shape: f32[2,8,256], index: 4, kind: output, shape index: {}]  }
   0x1   :  { %11 = vsyncpa [#allocation3 + $0x1], 0  ;;  %s1315_s15 = smov 0   ;;  %s1317_s16 = smov 0  }
   0x2   :  { %s1319_s17 = smov 0   ;;  %s1321_s18 = smov 0  }
   0x3 LB: > { %s1336_s19 = sadd.s32 4294967295, %s1277_s18   ;;  %s1113_s20 = sadd.s32 4294967294, %s1277_s18   ;;  %s1277_s18 = sphi %s1321_s18, %s1476_s18   ;;  %s1273_s17 = sphi %s1319_s17, %s1475_s17   ;;  %s1269_s16 = sphi %s1317_s16, %s1474_s16   ;;  %s1265_s15 = sphi %s1315_s15, %s1473_s15  }
   0x4   : > { %s1340_s21 = sadd.s32 1, %s1277_s18   ;;  %s113_s22 = sadd.s32 1, %s1273_s17 }
   0x5   : > { %s110_s23 = ssub.s32 %s1277_s18, %s1340_s21  ;;  %p123_p0 = scmp.ne.s32.totalorder %s1273_s17, %s1269_s16 }
   0x6   : > { %p111_p1 = scmp.eq.s32.totalorder %s110_s23, 0  ;;  %p124_p2 = scmp.eq.s32.totalorder %s1336_s19, 1 }
   0x7   : > { %p129_p3 = scmp.ne.s32.totalorder %s1269_s16, %s1265_s15  ;;  %p130_p4 = scmp.eq.s32.totalorder %s1113_s20, 1 }
   0x8   : > { %s1351_s24 = scalar_select %p111_p1, %s1273_s17, %s113_s22  }
   0x9   : > { %p1353_p5 = por %p124_p2, %p123_p0  ;;  %p1357_p6 = por %p130_p4, %p129_p3 }
   0xa   : > { %p1116_p7 = scmp.ge.s32.totalorder %s1277_s18, 1  ;;  %p165_p8 = scmp.lt.s32.totalorder %s1277_s18, 3 }
   0xc   : > { %p166_p9 = pnand %p1116_p7, %p165_p8 }
   0xd   : > { %p191_p10 = scmp.lt.s32.totalorder (!%p166_p9), %s1336_s19, 1  ;;  %v1279_v0 = vmov (!%p166_p9), 0.0   ;;  %s1280_s6 = smov (!%p166_p9), 112   ;;  %v207_v3 = vld [vmem:[%s1468_s2] sm:$0xff] (!%p166_p9)  ;;  %vm225_vm0 = vcmask (!%p166_p9), 64512   ;;  %v1286_v5 = vmov (!%p166_p9), 0   ;;  %v197_v61 = vlaneseq (!%p166_p9) }
   0xe   : > { %169 = sbr.rel (%p166_p9) target bundleno = 449 (0x1c1), region = 36  ;;  %367 = vmatprep.mubr.f32.mxu0 (!%p166_p9), %v1279_v0  ;;  %293 = vmatprep.mubr.f32.mxu1 (!%p166_p9), %v1279_v0  ;;  %s1281_s9 = smov (!%p166_p9), 96   ;;  %v1015_v6 = vld [vmem:[%s1469_s3] sm:$0xff] (!%p166_p9)  ;;  %vm220_vm1 = vcmask (!%p166_p9), 916480   ;;  %v1119_v12 = vld [vmem:[%s1468_s2 + $0x18] sm:$0xff] (!%p166_p9)  ;;  %vm382_vm2 = vcmask (!%p166_p9), 785408  }
   0xf   : > { %s1282_s10 = smov (!%p166_p9), 111   ;;  %s1283_s11 = smov (!%p166_p9), 110   ;;  %1206 = vset.pattern.permute.xlu0 (!%p166_p9), %v1286_v5  ;;  %v1122_v18 = vld [vmem:[%s1468_s2 + $0x30] sm:$0xff] (!%p166_p9)  ;;  %vm485_vm3 = vcmask (!%p166_p9), 908288   ;;  %v1125_v24 = vld [vmem:[%s1468_s2 + $0x20] sm:$0xff] (!%p166_p9)  ;;  %vm750_vm4 = vcmask (!%p166_p9), 900096  }
  0x10   : > { %s1284_s12 = smov (!%p166_p9), 127   ;;  %s1285_s13 = smov (!%p166_p9), 126   ;;  %v1131_v30 = vld [vmem:[%s1468_s2 + $0x28] sm:$0xff] (!%p166_p9)  ;;  %vm570_vm5 = vcmask (!%p166_p9), 1039360   ;;  %vm835_vm6 = vcmask (!%p166_p9), 1031168   ;;  %v1130_v42 = vld [vmem:[%s1468_s2 + $0x10] sm:$0xff] (!%p166_p9) }
  0x11   : > { %s1287_s14 = smov (!%p166_p9), 95   ;;  %s1288_s20 = smov (!%p166_p9), 94   ;;  %v1124_v36 = vld [vmem:[%s1468_s2 + $0x8] sm:$0xff] (!%p166_p9)  ;;  %vm657_vm7 = vcmask (!%p166_p9), 777216   ;;  %v1128_v48 = vld [vmem:[%s1468_s2 + $0x38] sm:$0xff] (!%p166_p9)  ;;  %vm922_vm8 = vcmask (!%p166_p9), 769024  }
  0x12   : > { %v1134_v54 = vld [vmem:[%s1468_s2 + $0x40] sm:$0xff] (!%p166_p9)  ;;  %v198_v62 = vshrl.u32 (!%p166_p9), %v197_v61, 7  ;;  %s1143_s30 = sshll.u32 (!%p166_p9), %s1336_s19, 8 }
  0x14   : > { %v199_v63 = vsub.s32 (!%p166_p9), 0, %v198_v62 }
  0x15   : > { %s192_s27 = scalar_select %p191_p10, %s1336_s19, 1 }
  0x17   : > { %s1156_s28 = smul.u32 24, %s192_s27 }
  0x19   : > { %s195_s5 = scalar_lea.vmem %s1467_s1, %s1156_s28  ;;  %s188_s28 = sand.u32 1, %s1269_s16  }
  0x1a   : > { %v206_v1 = vld [vmem:[%s195_s5 + $0x8] sm:$0xff]  ;;  %v205_v2 = vld [vmem:[%s195_s5] sm:$0xff]  ;;  %v208_v4 = vld [vmem:[%s195_s5 + $0x10] sm:$0xff]  ;;  %s1117_s29 = sshll.u32 %s188_s28, 4 }
  0x1b   : > { %216 = vrot.lane.b32.xlu0 %v206_v1, %s1280_s6  ;;  %214 = vrot.lane.b32.xlu1 %v205_v2, %s1280_s6  ;;  %s190_s5 = scalar_lea.vmem [#allocation2], %s1117_s29 }
  0x1c   : > { %303 = vmatprep.subr.mxu0 %v206_v1 }
  0x1d   : > { %304 = vmatpush1.msra.mxu0 %v205_v2 }
  0x1e   : > { %1121 = vmatmul.mubr.msk.f32.vlgmr.msra.gmra.mrb[0].mxu0 %vm225_vm0, %v207_v3 }
  0x1f   : > { %218 = vrot.lane.b32.xlu0 %v208_v4, %s1280_s6  ;;  %378 = vrot.lane.b32.xlu1 %v206_v1, %s1281_s9  ;;  %s1054_s6 = sshll.u32 %s190_s5, 4  ;;  %s1426_s6 = int_to_ptr.vmem [resolvable:$true] %s1054_s6 }
  0x20   : > { %454 = vmatprep.mubr.f32.mxu0 %v1279_v0  ;;  %s1215_s19 = scalar_lea.vmem %s1426_s6, 256 }
  0x21   : > { %p1216_p11 = scmp.ne.s32.totalorder %s1426_s6, %s1215_s19 }
  0x23   : > { %380 = vrot.lane.b32.xlu0 %v208_v4, %s1281_s9  ;;  %376 = vrot.lane.b32.xlu1 %v205_v2, %s1281_s9  ;;  %s1424_s9 = scalar_lea.hbm %s1470_s4, %s1143_s30  ;;  %p1217_p12 = pnand %p1216_p11, %p1353_p5 }
  0x25   : > { %p1218_p13 = pneg %p1217_p12 }
  0x27   : > { %481 = vrot.lane.b32.xlu0 %v206_v1, %s1282_s10  ;;  %483 = vrot.lane.b32.xlu1 %v208_v4, %s1282_s10 }
  0x2b   : > { %479 = vrot.lane.b32.xlu0 %v205_v2, %s1282_s10  ;;  %746 = vrot.lane.b32.xlu1 %v206_v1, %s1283_s11  ;;  %s1040_s10 = scalar_lea.sflag [#allocation3], %s188_s28 }
  0x2f   : > { %748 = vrot.lane.b32.xlu0 %v208_v4, %s1283_s11  ;;  %744 = vrot.lane.b32.xlu1 %v205_v2, %s1283_s11  ;;  %s1289_s11 = smov [#allocation2]  }
  0x33   : > { %566 = vrot.lane.b32.xlu0 %v206_v1, %s1284_s12  ;;  %568 = vrot.lane.b32.xlu1 %v208_v4, %s1284_s12 }
  0x37   : > { %564 = vrot.lane.b32.xlu0 %v205_v2, %s1284_s12  ;;  %831 = vrot.lane.b32.xlu1 %v206_v1, %s1285_s13  ;;  %s1219_s12 = sshll.u32 %s1289_s11, 4  ;;  %s1220_s12 = int_to_ptr.vmem [resolvable:$false] %s1219_s12 }
  0x38   : > { %p1222_p0 = scmp.lt.s32.totalorder %s1426_s6, %s1220_s12 }
  0x3b   : > { %833 = vrot.lane.b32.xlu0 %v208_v4, %s1285_s13  ;;  %829 = vrot.lane.b32.xlu1 %v205_v2, %s1285_s13  ;;  %s1221_s13 = scalar_lea.vmem %s1220_s12, 512 }
  0x3c   : > { %p1223_p1 = scmp.lt.s32.totalorder %s1221_s13, %s1215_s19 }
  0x3e   : > { %p1224_p2 = por %p1223_p1, %p1222_p0 }
  0x3f   : > { %653 = vrot.lane.b32.xlu0 %v206_v1, %s1287_s14  ;;  %655 = vrot.lane.b32.xlu1 %v208_v4, %s1287_s14 }
  0x40   : > { %p1225_p3 = pnand %p1224_p2, %p1218_p13 }
  0x43   : > { %651 = vrot.lane.b32.xlu0 %v205_v2, %s1287_s14  ;;  %918 = vrot.lane.b32.xlu1 %v206_v1, %s1288_s20  ;;  %v203_v1 = vsub.s32 1, %v198_v62 }
  0x47   : > { %920 = vrot.lane.b32.xlu0 %v208_v4, %s1288_s20  ;;  %916 = vrot.lane.b32.xlu1 %v205_v2, %s1288_s20 }
  0x4b   : > { %1018 = vperm.xlu0 %1206, %v1015_v6  }
  0x8d   : > { %v217_v7 = vpop.permute.xlu0 %216  ;;  %v215_v8 = vpop.permute.xlu1 %214 }
  0x8e   : > { %v221_v13 = vsel %vm220_vm1, %v215_v8, %v217_v7 }
  0x91   : > { %v219_v9 = vpop.permute.xlu0 %218  ;;  %v379_v10 = vpop.permute.xlu1 %378 }
  0x92   : > { %v222_v11 = vsel %vm220_vm1, %v217_v7, %v219_v9 }
  0x93   : > { %229 = vmatprep.subr.mxu1 %v222_v11 }
  0x94   : > { %230 = vmatpush1.msra.mxu1 %v221_v13 }
  0x95   : > { %v381_v14 = vpop.permute.xlu0 %380  ;;  %v377_v15 = vpop.permute.xlu1 %376  ;;  %1120 = vmatmul.mubr.msk.f32.vlgmr.msra.gmra.mrb[0].mxu1 %vm225_vm0, %v1119_v12 }
  0x96   : > { %v383_v16 = vsel %vm382_vm2, %v377_v15, %v379_v10  ;;  %v384_v17 = vsel %vm382_vm2, %v379_v10, %v381_v14  ;;  %557 = vmatprep.mubr.f32.mxu1 %v1279_v0 }
  0x97   : > { %390 = vmatprep.subr.mxu0 %v384_v17 }
  0x98   : > { %391 = vmatpush1.msra.mxu0 %v383_v16 }
  0x99   : > { %v482_v19 = vpop.permute.xlu0 %481  ;;  %v484_v20 = vpop.permute.xlu1 %483  ;;  %1123 = vmatmul.mubr.msk.f32.vlgmr.msra.gmra.mrb[0].mxu0 %vm225_vm0, %v1122_v18 }
  0x9a   : > { %v487_v21 = vsel %vm485_vm3, %v482_v19, %v484_v20  ;;  %822 = vmatprep.mubr.f32.mxu0 %v1279_v0 }
  0x9b   : > { %493 = vmatprep.subr.mxu1 %v487_v21 }
  0x9d   : > { %v480_v22 = vpop.permute.xlu0 %479  ;;  %v747_v23 = vpop.permute.xlu1 %746 }
  0x9e   : > { %v486_v25 = vsel %vm485_vm3, %v480_v22, %v482_v19 }
  0x9f   : > { %494 = vmatpush1.msra.mxu1 %v486_v25 }
  0xa0   : > { %1126 = vmatmul.mubr.msk.f32.vlgmr.msra.gmra.mrb[2].mxu1 %vm225_vm0, %v1125_v24 }
  0xa1   : > { %v749_v26 = vpop.permute.xlu0 %748  ;;  %v745_v27 = vpop.permute.xlu1 %744  ;;  %642 = vmatprep.mubr.f32.mxu1 %v1279_v0 }
  0xa2   : > { %v751_v28 = vsel %vm750_vm4, %v745_v27, %v747_v23  ;;  %v752_v29 = vsel %vm750_vm4, %v747_v23, %v749_v26 }
  0xa3   : > { %758 = vmatprep.subr.mxu0 %v752_v29 }
  0xa4   : > { %759 = vmatpush1.msra.mxu0 %v751_v28 }
  0xa5   : > { %v567_v31 = vpop.permute.xlu0 %566  ;;  %v569_v32 = vpop.permute.xlu1 %568  ;;  %1132 = vmatmul.mubr.msk.f32.vlgmr.msra.gmra.mrb[2].mxu0 %vm225_vm0, %v1131_v30 }
  0xa6   : > { %v572_v33 = vsel %vm570_vm5, %v567_v31, %v569_v32  ;;  %907 = vmatprep.mubr.f32.mxu0 %v1279_v0 }
  0xa7   : > { %578 = vmatprep.subr.mxu1 %v572_v33 }
  0xa9   : > { %v565_v34 = vpop.permute.xlu0 %564  ;;  %v832_v35 = vpop.permute.xlu1 %831 }
  0xaa   : > { %v571_v37 = vsel %vm570_vm5, %v565_v34, %v567_v31 }
  0xab   : > { %579 = vmatpush1.msra.mxu1 %v571_v37 }
  0xac   : > { %1127 = vmatmul.mubr.msk.f32.vlgmr.msra.gmra.mrb[2].mxu1 %vm225_vm0, %v1124_v36 }
  0xad   : > { %v834_v38 = vpop.permute.xlu0 %833  ;;  %v830_v39 = vpop.permute.xlu1 %829  ;;  %729 = vmatprep.mubr.f32.mxu1 %v1279_v0 }
  0xae   : > { %v836_v40 = vsel %vm835_vm6, %v830_v39, %v832_v35  ;;  %v837_v41 = vsel %vm835_vm6, %v832_v35, %v834_v38 }
  0xaf   : > { %843 = vmatprep.subr.mxu0 %v837_v41 }
  0xb0   : > { %844 = vmatpush1.msra.mxu0 %v836_v40 }
  0xb1   : > { %v654_v43 = vpop.permute.xlu0 %653  ;;  %v656_v44 = vpop.permute.xlu1 %655  ;;  %1133 = vmatmul.mubr.msk.f32.vlgmr.msra.gmra.mrb[2].mxu0 %vm225_vm0, %v1130_v42 }
  0xb2   : > { %v659_v45 = vsel %vm657_vm7, %v654_v43, %v656_v44  ;;  %994 = vmatprep.mubr.f32.mxu0 %v1279_v0  ;;  %v196_v0 = vld [vmem:[%s1466_s0] sm:$0x3] }
  0xb3   : > { %665 = vmatprep.subr.mxu1 %v659_v45  ;;  %v200_v2 = vrot.slane %v196_v0, %v199_v63  ;;  %v204_v3 = vrot.slane %v196_v0, %v203_v1 }
  0xb5   : > { %v652_v46 = vpop.permute.xlu0 %651  ;;  %v919_v47 = vpop.permute.xlu1 %918  ;;  %v463_v4 = vadd.s32 4294967295, %v200_v2  ;;  %v464_v5 = vadd.s32 4294967295, %v204_v3  ;;  %v1003_v6 = vadd.s32 1, %v200_v2  ;;  %v1004_v7 = vadd.s32 1, %v204_v3 }
  0xb6   : > { %v658_v49 = vsel %vm657_vm7, %v652_v46, %v654_v43 }
  0xb7   : > { %666 = vmatpush1.msra.mxu1 %v658_v49  ;;  %vm465_vm9 = vcmp.ge.s32.totalorder %v463_v4, 0  ;;  %vm467_vm10 = vcmp.lt.s32.totalorder %v463_v4, 16  ;;  %vm466_vm11 = vcmp.ge.s32.totalorder %v464_v5, 0  ;;  %vm468_vm12 = vcmp.lt.s32.totalorder %v464_v5, 16 }
  0xb8   : > { %1129 = vmatmul.mubr.msk.f32.vlgmr.msra.gmra.mrb[2].mxu1 %vm225_vm0, %v1128_v48  ;;  %vm469_vm13 = vmand %vm465_vm9, %vm467_vm10  ;;  %vm1005_vm15 = vcmp.ge.s32.totalorder %v1003_v6, 0  ;;  %vm1006_vm1 = vcmp.ge.s32.totalorder %v1004_v7, 0  ;;  %vm1008_vm2 = vcmp.lt.s32.totalorder %v1004_v7, 16 }
  0xb9   : > { %v921_v50 = vpop.permute.xlu0 %920  ;;  %v917_v51 = vpop.permute.xlu1 %916  ;;  %vm470_vm14 = vmand %vm466_vm11, %vm468_vm12 }
  0xba   : > { %v923_v52 = vsel %vm922_vm8, %v917_v51, %v919_v47  ;;  %v924_v53 = vsel %vm922_vm8, %v919_v47, %v921_v50  ;;  %vm1010_vm4 = vmand %vm1006_vm1, %vm1008_vm2 }
  0xbb   : > { %930 = vmatprep.subr.mxu0 %v924_v53 }
  0xbc   : > { %931 = vmatpush1.msra.mxu0 %v923_v52 }
  0xbd   : > { %1135 = vmatmul.mubr.msk.f32.vlgmr.msra.gmra.mrb[2].mxu0 %vm225_vm0, %v1134_v54  ;;  %vm1007_vm0 = vcmp.lt.s32.totalorder %v1003_v6, 16 }
  0xbe   : > { %vm1009_vm3 = vmand %vm1005_vm15, %vm1007_vm0 }
  0xca   : > { %v1019_v17 = vpop.permute.xlu0 %1018 }
 0x168   : > { %v295_v55 = vpop.f32.mrb[0].mxu1 }
 0x169   : > { %v297_v56 = vpop.f32.mrb[1].mxu1 }
 0x16c   : > { %v456_v57 = vpop.f32.mrb[0].mxu0 }
 0x16d   : > { %v1144_v58 = vadd.f32 %v456_v57, %v295_v55  ;;  %v458_v59 = vpop.f32.mrb[1].mxu0 }
 0x16e   : > { %v1145_v60 = vadd.f32 %v458_v59, %v297_v56 }
 0x16f   : > { %v471_v8 = vsel %vm469_vm13, %v1144_v58, 0.0 }
 0x170   : > { %v472_v11 = vsel %vm470_vm14, %v1145_v60, 0.0 }
 0x18b   : > { %v731_v9 = vpop.f32.mrb[2].mxu1 }
 0x18c   : > { %v738_v10 = vadd.f32 %v731_v9, %v471_v8  ;;  %v733_v12 = vpop.f32.mrb[3].mxu1 }
 0x18d   : > { %v739_v13 = vadd.f32 %v733_v12, %v472_v11 }
 0x190   : > { %v996_v14 = vpop.f32.mrb[2].mxu0 }
 0x191   : > { %v1011_v15 = vsel %vm1009_vm3, %v996_v14, 0.0  ;;  %v998_v16 = vpop.f32.mrb[3].mxu0 }
 0x192   : > { %v1013_v18 = vadd.f32 %v1011_v15, %v738_v10  ;;  %v1012_v19 = vsel %vm1010_vm4, %v998_v16, 0.0 }
 0x193   : > { %v1014_v20 = vadd.f32 %v1012_v19, %v739_v13 }
 0x194   : > { %v1021_v21 = vadd.f32 %v1019_v17, %v1013_v18 }
 0x195   : > { %v1022_v22 = vadd.f32 %v1019_v17, %v1014_v20 }
 0x196   : > { %v1136_v23 = vmul.f32 -1.442695, %v1021_v21 }
 0x197   : > { %v1137_v24 = vmul.f32 -1.442695, %v1022_v22 }
 0x198   : > { %1207 = vpow2.f32 %v1136_v23 }
 0x199   : > { %1209 = vpow2.f32 %v1137_v24 }
 0x1a2   : > { %v1208_v25 = vpop.eup %1207 }
 0x1a3   : > { %v1210_v26 = vpop.eup %1209  ;;  %v1029_v27 = vadd.f32 1.0, %v1208_v25 }
 0x1a4   : > { %v1030_v28 = vadd.f32 1.0, %v1210_v26 }
 0x1a5   : > { %1211 = vrcp.f32 %v1029_v27 }
 0x1a6   : > { %1213 = vrcp.f32 %v1030_v28 }
 0x1af   : > { %v1212_v29 = vpop.eup %1211 }
 0x1b0   : > { %v1214_v30 = vpop.eup %1213  ;;  %v1035_v31 = vmul.f32 %v1212_v29, %v1021_v21 }
 0x1b1   : > { %v1036_v32 = vmul.f32 %v1214_v30, %v1022_v22 }
 0x1b2   : > { %1037 = vst [vmem:[%s190_s5] sm:$0xff] %v1035_v31 }
 0x1b3   : > { %1038 = vst [vmem:[%s190_s5 + $0x8] sm:$0xff] %v1036_v32 }
 0x1b4   : > { %1228 = shalt.err (!%p1225_p3)
}
 0x1b5   : > { %s1229_s14 = scalar_lea.hbm %s1424_s9, 256  ;;  %s1233_s23 = scalar_lea.hbm %s1470_s4, 512 }
 0x1b6   : > { %p1230_p4 = scmp.ne.s32.totalorder %s1424_s9, %s1229_s14  ;;  %p1234_p9 = scmp.lt.u32.totalorder %s1424_s9, %s1470_s4 }
 0x1b7   : > { %p1235_p10 = scmp.lt.u32.totalorder %s1233_s23, %s1229_s14  ;;  %p1237_p12 = scmp.lt.u32.totalorder %s1229_s14, %s1424_s9 }
 0x1b8   : > { %p1231_p7 = pnand %p1230_p4, %p1353_p5 }
 0x1b9   : > { %p1236_p11 = por %p1235_p10, %p1234_p9 }
 0x1ba   : > { %p1232_p8 = pneg %p1231_p7 }
 0x1bb   : > { %p1238_p13 = por %p1237_p12, %p1236_p11 }
 0x1bd   : > { %p1239_p0 = pnand %p1238_p13, %p1232_p8 }
 0x1bf   : > { %1242 = shalt.err (!%p1239_p0)
}
 0x1c0   : > { %1157 = dma.vmem_to_hbm [thread:$0]  (%p1353_p5), %s1426_s6, 256, %s1424_s9, %s1040_s10  }
 0x1c1 PF: > { %p1163_p1 = scmp.ge.s32.totalorder %s1277_s18, 2  ;;  %s1066_s29 = sand.u32 1, %s1265_s15  }
 0x1c2   : > { %s1067_s30 = scalar_lea.sflag [#allocation3], %s1066_s29 }
 0x1c3   : > { %p1160_p2 = pnand %p1163_p1, %p1357_p6 }
 0x1c5   : > { %1260 = dma.done.wait (!%p1160_p2), %s1067_s30, 256  }
 0x1c6   : > { %1262 = vsyncadd (!%p1160_p2), %s1067_s30, 4294967040  ;;  %p14_p3 = scmp.ge.s32.totalorder %s1340_s21, 4   ;;  %s1473_s15 = smov %s1269_s16 }
 0x1c7   : > { %s1474_s16 = smov %s1273_s17  ;;  %s1475_s17 = smov %s1351_s24 }
 0x1c8   : > { %s1476_s18 = smov %s1340_s21  ;;  %16 = sbr.rel (!%p14_p3) target bundleno = 3 (0x3), region = 79 }
 0x1cf   :  { %1072 = vsyncpa [#allocation3], 1 }
 0x1d0   :  { %1074 = vsyncpa [#allocation3 + $0x1], 1 }

</bundles_post_ra>
